<compile_context>
chip_gen: v6e
topology: v6e:2x2x1
jax: 0.10.0
libtpu: 0.0.40
codegen_flags: <defaults>
</compile_context>

<pallas_src>
import functools
import math

import jax
import jax.numpy as jnp
from jax.experimental import pallas as pl
from jax.experimental.pallas import tpu as pltpu


def _round_up(x, m):
    return ((x + m - 1) // m) * m


# -----------------------------------------------------------------------------
# Capability probe: is pipeline_mode=pl.Buffered(1) accepted by this JAX / Mosaic?
# -----------------------------------------------------------------------------
_BUFFERED_SINGLE_OK = None


def _buffered_single_supported():
    global _BUFFERED_SINGLE_OK
    if _BUFFERED_SINGLE_OK is None:
        try:
            def _probe_kernel(a_ref, o_ref):
                o_ref[...] = a_ref[...]

            x = jnp.zeros((8, 128), jnp.float32)
            out = pl.pallas_call(
                _probe_kernel,
                out_shape=jax.ShapeDtypeStruct((8, 128), jnp.float32),
                grid=(1,),
                in_specs=[pl.BlockSpec((8, 128), lambda i: (0, 0),
                                       pipeline_mode=pl.Buffered(1))],
                out_specs=pl.BlockSpec((8, 128), lambda i: (i, 0)),
            )(x)
            jax.block_until_ready(out)
            _BUFFERED_SINGLE_OK = True
        except Exception:
            _BUFFERED_SINGLE_OK = False
    return _BUFFERED_SINGLE_OK


def _const_block_spec(shape):
    """BlockSpec for an array whose block never changes across the grid (weights/biases)."""
    if _buffered_single_supported():
        return pl.BlockSpec(shape, lambda i: (0, 0), pipeline_mode=pl.Buffered(1))
    return pl.BlockSpec(shape, lambda i: (0, 0))


# -----------------------------------------------------------------------------
# Fused multi-layer MLP kernel:
#   h = x ; for each layer l: h = relu?( (h.bf16 @ W_l.bf16 -> f32) + b_l ) ; opt. LogSoftmax
# All intermediate activations stay on-chip (never round-trip HBM between layers).
# -----------------------------------------------------------------------------
def _fused_mlp_kernel(*refs, relu_flags, log_softmax, valid_out):
    x_ref = refs[0]
    o_ref = refs[-1]
    wb = refs[1:-1]            # interleaved: w0, b0, w1, b1, ...
    h = x_ref[...]             # (tb, in_pad) f32
    for l, do_relu in enumerate(relu_flags):   # static unroll over layers
        w = wb[2 * l][...]                      # (din_pad_l, dout_pad_l) bf16
        b = wb[2 * l + 1][...]                  # (1, dout_pad_l) f32
        y = jnp.dot(h.astype(w.dtype), w, preferred_element_type=jnp.float32) + b
        if do_relu:
            y = jnp.maximum(y, 0.0)
        h = y                                   # f32; padded lanes stay exactly 0
    if log_softmax:
        # Mask padded lanes (f32 only; -1e30 would overflow bf16) so they don't corrupt max/sum.
        col = jax.lax.broadcasted_iota(jnp.int32, h.shape, 1)
        h = jnp.where(col < valid_out, h, jnp.float32(-1e30))
        m = jnp.max(h, axis=1, keepdims=True)
        s = h - m
        lse = jnp.log(jnp.sum(jnp.exp(s), axis=1, keepdims=True))
        h = s - lse
    o_ref[...] = h.astype(o_ref.dtype)


def _fused_mlp_call(xp, Ws, Bs, *, relu, log_softmax, valid_out, tb):
    b_pad, in_pad = xp.shape
    out_pad = Ws[-1].shape[1]

    kernel = functools.partial(
        _fused_mlp_kernel,
        relu_flags=tuple(relu),
        log_softmax=bool(log_softmax),
        valid_out=int(valid_out),
    )

    wb_inputs = []
    wb_specs = []
    for w, b in zip(Ws, Bs):
        wb_inputs += [w, b]
        wb_specs += [_const_block_spec(tuple(w.shape)), _const_block_spec(tuple(b.shape))]

    # Explicit VMEM budget: resident (single-buffered) weights+biases, double-buffered
    # activation in/out tiles, plus headroom for on-chip intermediates.
    weight_bytes = sum(int(w.size) * jnp.dtype(w.dtype).itemsize for w in Ws)
    bias_bytes = sum(8 * int(b.shape[1]) * 4 for b in Bs)          # (1,d) pads to 8 sublanes
    act_bytes = 2 * tb * in_pad * 4 + 2 * tb * out_pad * 4
    inter_bytes = 4 * tb * max(int(w.shape[1]) for w in Ws) * 4
    est = weight_bytes + bias_bytes + act_bytes + inter_bytes
    vmem_limit = int(min(64 * 1024 * 1024, max(32 * 1024 * 1024, 2 * est)))

    return pl.pallas_call(
        kernel,
        out_shape=jax.ShapeDtypeStruct((b_pad, out_pad), jnp.float32),
        grid=(b_pad // tb,),
        in_specs=[pl.BlockSpec((tb, in_pad), lambda i: (i, 0))] + wb_specs,
        out_specs=pl.BlockSpec((tb, out_pad), lambda i: (i, 0)),
        compiler_params=pltpu.CompilerParams(
            dimension_semantics=("parallel",),
            vmem_limit_bytes=vmem_limit,
        ),
    )(xp, *wb_inputs)


def _pick_tb(B):
    """Batch tile: tiny -> 1 tile; medium -> 2 grid steps (both v7x TCs busy, waste < 8 rows);
    large -> 128/256-row tiles so padding waste stays bounded while amortizing per-step cost."""
    b8 = _round_up(B, 8)
    if b8 <= 16:
        return b8
    if b8 <= 512:
        return _round_up((b8 + 1) // 2, 8)
    if b8 <= 2048:
        return 128
    return 256


def _fused_mlp_forward(x, Ws, Bs, *, relu, log_softmax, in_dim, out_dim, in_pad):
    """x: (B, in_dim) -> (B, out_dim) through the fused packed layer stack (single pallas_call)."""
    B, din = x.shape
    tb = _pick_tb(B)
    b_pad = _round_up(_round_up(B, 8), tb)
    xp = jnp.zeros((b_pad, in_pad), jnp.float32).at[:B, :din].set(x.astype(jnp.float32))
    out = _fused_mlp_call(xp, Ws, Bs, relu=relu, log_softmax=log_softmax,
                          valid_out=out_dim, tb=tb)
    return out[:B, :out_dim]


# -----------------------------------------------------------------------------
# Deterministic parameter init (matches nn.Linear's U(-1/sqrt(fan_in), 1/sqrt(fan_in)))
# -----------------------------------------------------------------------------
def init_linear_params(key, din, dout):
    kw, kb = jax.random.split(key)
    bound = 1.0 / math.sqrt(din)
    w = jax.random.uniform(kw, (din, dout), jnp.float32, -bound, bound)
    b = jax.random.uniform(kb, (1, dout), jnp.float32, -bound, bound)
    return w, b


def init_test_time_adapter(key, ae_dims, cl_dims):
    params = {"enc": [], "dec": [], "cls": []}
    for i in range(len(ae_dims) - 1):                      # AE encoder
        key, sub = jax.random.split(key)
        params["enc"].append(init_linear_params(sub, ae_dims[i], ae_dims[i + 1]))
    rev = list(reversed(ae_dims))
    for i in range(len(rev) - 1):                          # AE decoder (mirrored)
        key, sub = jax.random.split(key)
        params["dec"].append(init_linear_params(sub, rev[i], rev[i + 1]))
    for i in range(len(cl_dims) - 1):                      # classifier head
        key, sub = jax.random.split(key)
        params["cls"].append(init_linear_params(sub, cl_dims[i], cl_dims[i + 1]))
    return params


# -----------------------------------------------------------------------------
# Pack layer lists into per-layer 128-padded slabs (bf16 weights, f32 biases), once.
# Zero padding keeps the Linear+ReLU chain exact; the log-softmax masks padded lanes.
# -----------------------------------------------------------------------------
def _pack_path(layers, relu_flags, *, log_softmax, weight_dtype=jnp.bfloat16):
    Ws, Bs = [], []
    for (w, b) in layers:
        din, dout = w.shape
        dp, op = _round_up(din, 128), _round_up(dout, 128)
        Wp = jnp.zeros((dp, op), jnp.float32).at[:din, :dout].set(w).astype(weight_dtype)
        Bp = jnp.zeros((1, op), jnp.float32).at[:, :dout].set(b)
        Ws.append(Wp)
        Bs.append(Bp)
    return {
        "Ws": tuple(Ws),
        "Bs": tuple(Bs),
        "relu": tuple(bool(r) for r in relu_flags),
        "log_softmax": bool(log_softmax),
        "in_dim": int(layers[0][0].shape[0]),
        "out_dim": int(layers[-1][0].shape[1]),
        "in_pad": _round_up(int(layers[0][0].shape[0]), 128),
    }


def build_packed_model(params):
    enc, dec, cls = params["enc"], params["dec"], params["cls"]
    enc_relu = [i < len(enc) - 1 for i in range(len(enc))]   # ReLU between encoder layers, none on latent
    dec_relu = [i < len(dec) - 1 for i in range(len(dec))]   # ReLU between decoder layers, none on output
    cls_relu = [i < len(cls) - 1 for i in range(len(cls))]   # Linear+ReLU pairs, final Linear -> LogSoftmax
    return {
        "recon": _pack_path(enc + dec, enc_relu + dec_relu, log_softmax=False),
        "classify": _pack_path(enc + cls, enc_relu + cls_relu, log_softmax=True),
    }


def build_forward_fns(packed):
    """One jitted callable per path; pad -> fused pallas_call -> slice all fuse under jit."""
    fns = {}
    for name, path in packed.items():
        cfg = dict(relu=path["relu"], log_softmax=path["log_softmax"],
                   in_dim=path["in_dim"], out_dim=path["out_dim"], in_pad=path["in_pad"])

        def fwd(x, Ws, Bs, cfg=cfg):
            return _fused_mlp_forward(x, Ws, Bs, **cfg)

        fns[name] = functools.partial(jax.jit(fwd), Ws=path["Ws"], Bs=path["Bs"])
    return fns


def test_time_adapter_forward(fns, x, classifier=False):
    """Mirrors TestTimeAdapter.forward(x, classifier)."""
    x = x.astype(jnp.float32)
    return fns["classify"](x) if classifier else fns["recon"](x)


if __name__ == "__main__":
    # Small deterministic configuration consistent with the module:
    #   ae_dims = [32, 16, 8]  -> latent dim 8 ; cl_dims = [8, 16, 8]
    ae_dims = [32, 16, 8]
    cl_dims = [8, 16, 8]
    batch = 8

    key = jax.random.PRNGKey(0)
    key, pkey, xkey = jax.random.split(key, 3)

    params = init_test_time_adapter(pkey, ae_dims, cl_dims)
    packed = build_packed_model(params)
    fns = build_forward_fns(packed)
    x = jax.random.normal(xkey, (batch, ae_dims[0]), dtype=jnp.float32)

    # Path 1: autoencoder reconstruction (classifier=False) -- one fused pallas_call
    recon = jax.block_until_ready(test_time_adapter_forward(fns, x, classifier=False))
    assert recon.shape == (batch, ae_dims[0])

    # Path 2: encoder + classifier head with LogSoftmax (classifier=True) -- one fused pallas_call
    logprobs = jax.block_until_ready(test_time_adapter_forward(fns, x, classifier=True))
    assert logprobs.shape == (batch, cl_dims[-1])
    assert bool(jnp.allclose(jnp.sum(jnp.exp(logprobs), axis=1), 1.0, atol=1e-4))

    # Reference 1: mirrors the kernel math exactly (bf16 weight/activation operands, f32 accum).
    def ref_forward(params, x, classifier, quantize_bf16):
        def apply(layers, n_relu_all_but_last, h):
            for i, (w, b) in enumerate(layers):
                if quantize_bf16:
                    h = jnp.dot(h.astype(jnp.bfloat16), w.astype(jnp.bfloat16),
                                preferred_element_type=jnp.float32) + b
                else:
                    h = h @ w + b
                if i < len(layers) - 1:
                    h = jnp.maximum(h, 0.0)
            return h

        h = apply(params["enc"], True, x)
        if classifier:
            h = apply(params["cls"], True, h)
            return jax.nn.log_softmax(h, axis=1)
        return apply(params["dec"], True, h)

    assert bool(jnp.allclose(recon, ref_forward(params, x, False, True), atol=5e-3, rtol=5e-3))
    assert bool(jnp.allclose(logprobs, ref_forward(params, x, True, True), atol=5e-3, rtol=5e-3))

    # Reference 2: full-f32 math, looser tolerance (bounds the bf16-weight quantization error).
    assert bool(jnp.allclose(recon, ref_forward(params, x, False, False), atol=5e-2, rtol=5e-2))
    assert bool(jnp.allclose(logprobs, ref_forward(params, x, True, False), atol=5e-2, rtol=5e-2))

    print("KERNEL_OK")
</pallas_src>

<mosaic_0001>
module attributes {stable_mosaic.version = 11 : i64} {
  func.func @_fused_mlp_kernel(%arg0: i32, %arg1: memref<8x128xf32, #tpu.memory_space<vmem>>, %arg2: memref<128x128xbf16, #tpu.memory_space<vmem>>, %arg3: memref<1x128xf32, #tpu.memory_space<vmem>>, %arg4: memref<128x128xbf16, #tpu.memory_space<vmem>>, %arg5: memref<1x128xf32, #tpu.memory_space<vmem>>, %arg6: memref<128x128xbf16, #tpu.memory_space<vmem>>, %arg7: memref<1x128xf32, #tpu.memory_space<vmem>>, %arg8: memref<128x128xbf16, #tpu.memory_space<vmem>>, %arg9: memref<1x128xf32, #tpu.memory_space<vmem>>, %arg10: memref<8x128xf32, #tpu.memory_space<vmem>>) attributes {dimension_semantics = [#tpu.dimension_semantics<parallel>], iteration_bounds = array<i64: 1>, scalar_prefetch = 0 : i64, scratch_operands = 0 : i64, tpu.core_type = #tpu.core_type<tc>, window_params = [{transform_indices = @transform_0, window_bounds = array<i64: 8, 128>}, {pipeline_mode = #tpu.pipeline_mode<synchronous>, transform_indices = @transform_1, window_bounds = array<i64: 128, 128>}, {pipeline_mode = #tpu.pipeline_mode<synchronous>, transform_indices = @transform_2, window_bounds = array<i64: 1, 128>}, {pipeline_mode = #tpu.pipeline_mode<synchronous>, transform_indices = @transform_3, window_bounds = array<i64: 128, 128>}, {pipeline_mode = #tpu.pipeline_mode<synchronous>, transform_indices = @transform_4, window_bounds = array<i64: 1, 128>}, {pipeline_mode = #tpu.pipeline_mode<synchronous>, transform_indices = @transform_5, window_bounds = array<i64: 128, 128>}, {pipeline_mode = #tpu.pipeline_mode<synchronous>, transform_indices = @transform_6, window_bounds = array<i64: 1, 128>}, {pipeline_mode = #tpu.pipeline_mode<synchronous>, transform_indices = @transform_7, window_bounds = array<i64: 128, 128>}, {pipeline_mode = #tpu.pipeline_mode<synchronous>, transform_indices = @transform_8, window_bounds = array<i64: 1, 128>}, {transform_indices = @transform_9, window_bounds = array<i64: 8, 128>}]} {
    %c0 = arith.constant 0 : index
    %c0_0 = arith.constant 0 : index
    %0 = vector.load %arg1[%c0, %c0_0] : memref<8x128xf32, #tpu.memory_space<vmem>>, vector<8x128xf32>
    %c0_1 = arith.constant 0 : index
    %c0_2 = arith.constant 0 : index
    %1 = vector.load %arg2[%c0_1, %c0_2] : memref<128x128xbf16, #tpu.memory_space<vmem>>, vector<128x128xbf16>
    %c0_3 = arith.constant 0 : index
    %c0_4 = arith.constant 0 : index
    %2 = vector.load %arg3[%c0_3, %c0_4] : memref<1x128xf32, #tpu.memory_space<vmem>>, vector<1x128xf32>
    %3 = arith.truncf %0 : vector<8x128xf32> to vector<8x128xbf16>
    %cst = arith.constant dense<0.000000e+00> : vector<8x128xf32>
    %4 = tpu.matmul %3, %1, %cst {dimension_numbers = #tpu.dot_dimension_numbers<[1], [0], [0], [1], [0, 0, 1, 1], [], []>} : vector<8x128xbf16>, vector<128x128xbf16>, vector<8x128xf32> -> vector<8x128xf32>
    %5 = vector.broadcast %2 : vector<1x128xf32> to vector<8x128xf32>
    %6 = arith.addf %4, %5 : vector<8x128xf32>
    %cst_5 = arith.constant 0.000000e+00 : f32
    %7 = vector.broadcast %cst_5 : f32 to vector<8x128xf32>
    %8 = arith.maximumf %6, %7 : vector<8x128xf32>
    %c0_6 = arith.constant 0 : index
    %c0_7 = arith.constant 0 : index
    %9 = vector.load %arg4[%c0_6, %c0_7] : memref<128x128xbf16, #tpu.memory_space<vmem>>, vector<128x128xbf16>
    %c0_8 = arith.constant 0 : index
    %c0_9 = arith.constant 0 : index
    %10 = vector.load %arg5[%c0_8, %c0_9] : memref<1x128xf32, #tpu.memory_space<vmem>>, vector<1x128xf32>
    %11 = arith.truncf %8 : vector<8x128xf32> to vector<8x128xbf16>
    %cst_10 = arith.constant dense<0.000000e+00> : vector<8x128xf32>
    %12 = tpu.matmul %11, %9, %cst_10 {dimension_numbers = #tpu.dot_dimension_numbers<[1], [0], [0], [1], [0, 0, 1, 1], [], []>} : vector<8x128xbf16>, vector<128x128xbf16>, vector<8x128xf32> -> vector<8x128xf32>
    %13 = vector.broadcast %10 : vector<1x128xf32> to vector<8x128xf32>
    %14 = arith.addf %12, %13 : vector<8x128xf32>
    %c0_11 = arith.constant 0 : index
    %c0_12 = arith.constant 0 : index
    %15 = vector.load %arg6[%c0_11, %c0_12] : memref<128x128xbf16, #tpu.memory_space<vmem>>, vector<128x128xbf16>
    %c0_13 = arith.constant 0 : index
    %c0_14 = arith.constant 0 : index
    %16 = vector.load %arg7[%c0_13, %c0_14] : memref<1x128xf32, #tpu.memory_space<vmem>>, vector<1x128xf32>
    %17 = arith.truncf %14 : vector<8x128xf32> to vector<8x128xbf16>
    %cst_15 = arith.constant dense<0.000000e+00> : vector<8x128xf32>
    %18 = tpu.matmul %17, %15, %cst_15 {dimension_numbers = #tpu.dot_dimension_numbers<[1], [0], [0], [1], [0, 0, 1, 1], [], []>} : vector<8x128xbf16>, vector<128x128xbf16>, vector<8x128xf32> -> vector<8x128xf32>
    %19 = vector.broadcast %16 : vector<1x128xf32> to vector<8x128xf32>
    %20 = arith.addf %18, %19 : vector<8x128xf32>
    %cst_16 = arith.constant 0.000000e+00 : f32
    %21 = vector.broadcast %cst_16 : f32 to vector<8x128xf32>
    %22 = arith.maximumf %20, %21 : vector<8x128xf32>
    %c0_17 = arith.constant 0 : index
    %c0_18 = arith.constant 0 : index
    %23 = vector.load %arg8[%c0_17, %c0_18] : memref<128x128xbf16, #tpu.memory_space<vmem>>, vector<128x128xbf16>
    %c0_19 = arith.constant 0 : index
    %c0_20 = arith.constant 0 : index
    %24 = vector.load %arg9[%c0_19, %c0_20] : memref<1x128xf32, #tpu.memory_space<vmem>>, vector<1x128xf32>
    %25 = arith.truncf %22 : vector<8x128xf32> to vector<8x128xbf16>
    %cst_21 = arith.constant dense<0.000000e+00> : vector<8x128xf32>
    %26 = tpu.matmul %25, %23, %cst_21 {dimension_numbers = #tpu.dot_dimension_numbers<[1], [0], [0], [1], [0, 0, 1, 1], [], []>} : vector<8x128xbf16>, vector<128x128xbf16>, vector<8x128xf32> -> vector<8x128xf32>
    %27 = vector.broadcast %24 : vector<1x128xf32> to vector<8x128xf32>
    %28 = arith.addf %26, %27 : vector<8x128xf32>
    %c0_22 = arith.constant 0 : index
    %c0_23 = arith.constant 0 : index
    %29 = vector.load %arg10[%c0_22, %c0_23] : memref<8x128xf32, #tpu.memory_space<vmem>>, vector<8x128xf32>
    tpu.vector_store %arg10[%c0_22, %c0_23], %28 {strides = array<i32>} : memref<8x128xf32, #tpu.memory_space<vmem>>, vector<8x128xf32>,
    return
  }
  func.func @transform_0(%arg0: i32) -> (i32, i32) {
    %c0_i32 = arith.constant 0 : i32
    %c0_i32_0 = arith.constant 0 : i32
    return %arg0, %c0_i32 : i32, i32
  }
  func.func @transform_1(%arg0: i32) -> (i32, i32) {
    %c0_i32 = arith.constant 0 : i32
    %c0_i32_0 = arith.constant 0 : i32
    %c0_i32_1 = arith.constant 0 : i32
    return %c0_i32, %c0_i32_0 : i32, i32
  }
  func.func @transform_2(%arg0: i32) -> (i32, i32) {
    %c0_i32 = arith.constant 0 : i32
    %c0_i32_0 = arith.constant 0 : i32
    %c0_i32_1 = arith.constant 0 : i32
    return %c0_i32, %c0_i32_0 : i32, i32
  }
  func.func @transform_3(%arg0: i32) -> (i32, i32) {
    %c0_i32 = arith.constant 0 : i32
    %c0_i32_0 = arith.constant 0 : i32
    %c0_i32_1 = arith.constant 0 : i32
    return %c0_i32, %c0_i32_0 : i32, i32
  }
  func.func @transform_4(%arg0: i32) -> (i32, i32) {
    %c0_i32 = arith.constant 0 : i32
    %c0_i32_0 = arith.constant 0 : i32
    %c0_i32_1 = arith.constant 0 : i32
    return %c0_i32, %c0_i32_0 : i32, i32
  }
  func.func @transform_5(%arg0: i32) -> (i32, i32) {
    %c0_i32 = arith.constant 0 : i32
    %c0_i32_0 = arith.constant 0 : i32
    %c0_i32_1 = arith.constant 0 : i32
    return %c0_i32, %c0_i32_0 : i32, i32
  }
  func.func @transform_6(%arg0: i32) -> (i32, i32) {
    %c0_i32 = arith.constant 0 : i32
    %c0_i32_0 = arith.constant 0 : i32
    %c0_i32_1 = arith.constant 0 : i32
    return %c0_i32, %c0_i32_0 : i32, i32
  }
  func.func @transform_7(%arg0: i32) -> (i32, i32) {
    %c0_i32 = arith.constant 0 : i32
    %c0_i32_0 = arith.constant 0 : i32
    %c0_i32_1 = arith.constant 0 : i32
    return %c0_i32, %c0_i32_0 : i32, i32
  }
  func.func @transform_8(%arg0: i32) -> (i32, i32) {
    %c0_i32 = arith.constant 0 : i32
    %c0_i32_0 = arith.constant 0 : i32
    %c0_i32_1 = arith.constant 0 : i32
    return %c0_i32, %c0_i32_0 : i32, i32
  }
  func.func @transform_9(%arg0: i32) -> (i32, i32) {
    %c0_i32 = arith.constant 0 : i32
    %c0_i32_0 = arith.constant 0 : i32
    return %arg0, %c0_i32 : i32, i32
  }
}

</mosaic_0001>

<bundles_post_ra>
// kernel: fwd.1
= control target key start
LH: loop header
LB: loop body
LE: loop exit
PB: predicated region body
PF: predicated region fallthrough
CT: control target
= control target key end

     0   :  { %14 = vsyncpa [#allocation3], 0  ;;  %s1000_s0 = inlined_call_operand.vmem [shape: f32[8,128], index: 0, kind: input, shape index: {}]   ;;  %s1001_s1 = inlined_call_operand.hbm [shape: bf16[128,128], index: 1, kind: input, shape index: {}]   ;;  %s1002_s2 = inlined_call_operand.vmem [shape: f32[1,128], index: 2, kind: input, shape index: {}]   ;;  %s1003_s3 = inlined_call_operand.hbm [shape: bf16[128,128], index: 3, kind: input, shape index: {}]   ;;  %s1004_s4 = inlined_call_operand.vmem [shape: f32[1,128], index: 4, kind: input, shape index: {}]   ;;  %s1005_s5 = inlined_call_operand.hbm [shape: bf16[128,128], index: 5, kind: input, shape index: {}]   ;;  %s1006_s6 = inlined_call_operand.vmem [shape: f32[1,128], index: 6, kind: input, shape index: {}]   ;;  %s1007_s7 = inlined_call_operand.hbm [shape: bf16[128,128], index: 7, kind: input, shape index: {}]   ;;  %s1008_s8 = inlined_call_operand.vmem [shape: f32[1,128], index: 8, kind: input, shape index: {}]   ;;  %s1009_s9 = inlined_call_operand.hbm [shape: f32[8,128], index: 9, kind: output, shape index: {}]  }
   0x1   :  { %15 = vsyncpa [#allocation6], 0 }
   0x2   :  { %16 = vsyncpa [#allocation9], 0 }
   0x3   :  { %17 = vsyncpa [#allocation4], 0  ;;  %s859_s30 = smov [#allocation5]   ;;  %s860_s11 = smov [#allocation2]  }
   0x4   :  { %s39_s10 = sshll.u32 %s859_s30, 4  ;;  %s25_s12 = sshll.u32 %s860_s11, 4  ;;  %s40_s10 = int_to_ptr.vmem [resolvable:$true] %s39_s10  ;;  %s26_s12 = int_to_ptr.vmem [resolvable:$true] %s25_s12 }
   0x5   :  { %s759_s13 = scalar_lea.vmem %s40_s10, 1024  ;;  %p764_p1 = scmp.lt.s32.totalorder %s40_s10, %s40_s10 }
   0x6   :  { %p760_p0 = scmp.ne.s32.totalorder %s40_s10, %s759_s13  ;;  %p765_p2 = scmp.lt.s32.totalorder %s759_s13, %s759_s13 }
   0x8   :  { %p766_p3 = por %p765_p2, %p764_p1 }
   0xa   :  { %p767_p4 = pnand %p766_p3, %p760_p0 }
   0xc   :  { %770 = shalt.err (!%p767_p4)
}
   0xd   :  { %s861_s14 = smov 64   ;;  %s862_s15 = smov 4  }
   0xe   :  { %45 = dma.hbm_to_vmem [thread:$0]  %s1003_s3, 1024, %s40_s10, [#allocation6], %s861_s14, %s861_s14, %s862_s15  }
   0xf   :  { %s779_s18 = scalar_lea.vmem %s26_s12, 1024  ;;  %p784_p6 = scmp.lt.s32.totalorder %s26_s12, %s26_s12 }
  0x10   :  { %p780_p5 = scmp.ne.s32.totalorder %s26_s12, %s779_s18  ;;  %p785_p7 = scmp.lt.s32.totalorder %s779_s18, %s779_s18 }
  0x12   :  { %p786_p8 = por %p785_p7, %p784_p6 }
  0x14   :  { %p787_p9 = pnand %p786_p8, %p780_p5 }
  0x16   :  { %790 = shalt.err (!%p787_p9)
}
  0x17   :  { %31 = dma.hbm_to_vmem [thread:$0]  %s1001_s1, 1024, %s26_s12, [#allocation3], %s861_s14, %s861_s14, %s862_s15  }
  0x18   :  { %s863_s21 = smov [#allocation7]   ;;  %s864_s23 = smov [#allocation8]  }
  0x19   :  { %s53_s22 = sshll.u32 %s863_s21, 4  ;;  %s67_s24 = sshll.u32 %s864_s23, 4  ;;  %s54_s22 = int_to_ptr.vmem [resolvable:$true] %s53_s22  ;;  %s68_s24 = int_to_ptr.vmem [resolvable:$true] %s67_s24 }
  0x1a   :  { %s799_s3 = scalar_lea.vmem %s54_s22, 1024  ;;  %p804_p11 = scmp.lt.s32.totalorder %s54_s22, %s54_s22 }
  0x1b   :  { %p800_p10 = scmp.ne.s32.totalorder %s54_s22, %s799_s3  ;;  %p805_p12 = scmp.lt.s32.totalorder %s799_s3, %s799_s3 }
  0x1d   :  { %p806_p13 = por %p805_p12, %p804_p11 }
  0x1f   :  { %p807_p0 = pnand %p806_p13, %p800_p10 }
  0x21   :  { %810 = shalt.err (!%p807_p0)
}
  0x22   :  { %59 = dma.hbm_to_vmem [thread:$0]  %s1005_s5, 1024, %s54_s22, [#allocation6], %s861_s14, %s861_s14, %s862_s15  }
  0x23   :  { %s819_s1 = scalar_lea.vmem %s68_s24, 1024  ;;  %p824_p2 = scmp.lt.s32.totalorder %s68_s24, %s68_s24 }
  0x24   :  { %p820_p1 = scmp.ne.s32.totalorder %s68_s24, %s819_s1  ;;  %p825_p3 = scmp.lt.s32.totalorder %s819_s1, %s819_s1 }
  0x26   :  { %p826_p4 = por %p825_p3, %p824_p2 }
  0x28   :  { %p827_p5 = pnand %p826_p4, %p820_p1 }
  0x2a   :  { %830 = shalt.err (!%p827_p5)
}
  0x2b   :  { %73 = dma.hbm_to_vmem [thread:$0]  %s1007_s7, 1024, %s68_s24, [#allocation9], %s861_s14, %s861_s14, %s862_s15  }
  0x2c   :  { %851 = dma.done.wait [#allocation3], 1024  }
  0x2d   :  { %852 = vsyncadd [#allocation3], 4294966272 }
  0x2e   :  { %853 = dma.done.wait [#allocation6], 2048  }
  0x2f   :  { %854 = vsyncadd [#allocation6], 4294965248 }
  0x30   :  { %855 = dma.done.wait [#allocation9], 1024  }
  0x31   :  { %856 = vsyncadd [#allocation9], 4294966272  ;;  %v865_v0 = vmov 0.0   ;;  %vm866_vm0 = vmmov 0   ;;  %v719_v1 = vld [vmem:[#allocation2 + $0x38] sm:$0xff]   ;;  %v720_v2 = vld [vmem:[#allocation2 + $0x30] sm:$0xff]  }
  0x32   :  { %630 = vmatprep.subr.bf16.mxu0 %v865_v0  ;;  %646 = vmatprep.mubr.msk.bf16.mxu0 %vm866_vm0, %v865_v0  ;;  %v721_v3 = vld [vmem:[#allocation2 + $0x28] sm:$0xff]   ;;  %v727_v4 = vld [vmem:[#allocation5 + $0x38] sm:$0xff]   ;;  %v722_v5 = vld [vmem:[#allocation2 + $0x20] sm:$0xff]   ;;  %s867_s13 = smov [#allocation10]  }
  0x33   :  { %650 = vmatprep.subr.bf16.mxu1 %v865_v0  ;;  %666 = vmatprep.mubr.msk.bf16.mxu1 %vm866_vm0, %v865_v0  ;;  %v728_v6 = vld [vmem:[#allocation5 + $0x30] sm:$0xff]   ;;  %v723_v7 = vld [vmem:[#allocation2 + $0x18] sm:$0xff]   ;;  %v729_v8 = vld [vmem:[#allocation5 + $0x28] sm:$0xff]   ;;  %s547_s14 = sshll.u32 %s867_s13, 4  ;;  %s548_s14 = int_to_ptr.vmem [resolvable:$true] %s547_s14 }
  0x34   :  { %631 = vmatpush3.bf16.msra.mxu0 %v719_v1  ;;  %651 = vmatpush3.bf16.msra.mxu1 %v727_v4  ;;  %v724_v9 = vld [vmem:[#allocation2 + $0x10] sm:$0xff]   ;;  %v730_v10 = vld [vmem:[#allocation5 + $0x20] sm:$0xff]   ;;  %v725_v11 = vld [vmem:[#allocation2 + $0x8] sm:$0xff]   ;;  %p836_p7 = scmp.lt.s32.totalorder %s548_s14, %s548_s14 }
  0x35   :  { %632 = vmatprep.subr.bf16.mxu0 %v865_v0  ;;  %652 = vmatprep.subr.bf16.mxu1 %v865_v0  ;;  %v731_v12 = vld [vmem:[#allocation5 + $0x18] sm:$0xff]   ;;  %v726_v13 = vld [vmem:[#allocation2] sm:$0xff]   ;;  %v732_v15 = vld [vmem:[#allocation5 + $0x10] sm:$0xff]  }
  0x36   :  { %v89_v14 = vld [vmem:[%s1000_s0] sm:$0xff]  ;;  %v733_v17 = vld [vmem:[#allocation5 + $0x8] sm:$0xff]   ;;  %v735_v19 = vld [vmem:[#allocation7 + $0x38] sm:$0xff]  }
  0x37   :  { %v107_v16 = vpack.c.bf16 %v89_v14, %v89_v14  ;;  %v734_v18 = vld [vmem:[#allocation5] sm:$0xff]   ;;  %v736_v20 = vld [vmem:[#allocation7 + $0x30] sm:$0xff]   ;;  %v737_v21 = vld [vmem:[#allocation7 + $0x28] sm:$0xff]  }
  0x38   :  { %633 = vmatpush3.bf16.msra.mxu0 %v720_v2  ;;  %653 = vmatpush3.bf16.msra.mxu1 %v728_v6  ;;  %v738_v22 = vld [vmem:[#allocation7 + $0x20] sm:$0xff]   ;;  %v739_v23 = vld [vmem:[#allocation7 + $0x18] sm:$0xff]   ;;  %v740_v24 = vld [vmem:[#allocation7 + $0x10] sm:$0xff]  }
  0x39   :  { %634 = vmatprep.subr.bf16.mxu0 %v865_v0  ;;  %654 = vmatprep.subr.bf16.mxu1 %v865_v0  ;;  %v741_v25 = vld [vmem:[#allocation7 + $0x8] sm:$0xff]   ;;  %v558_v26 = vld [vmem:[%s1002_s2] ss:$0 sm:$0xff]  ;;  %v743_v35 = vld [vmem:[#allocation8 + $0x38] sm:$0xff]  }
  0x3a   :  { %v742_v34 = vld [vmem:[#allocation7] sm:$0xff]   ;;  %v744_v36 = vld [vmem:[#allocation8 + $0x30] sm:$0xff]   ;;  %v745_v37 = vld [vmem:[#allocation8 + $0x28] sm:$0xff]  }
  0x3b   :  { %v746_v38 = vld [vmem:[#allocation8 + $0x20] sm:$0xff]   ;;  %v747_v39 = vld [vmem:[#allocation8 + $0x18] sm:$0xff]   ;;  %v748_v40 = vld [vmem:[#allocation8 + $0x10] sm:$0xff]  }
  0x3c   :  { %635 = vmatpush3.bf16.msra.mxu0 %v721_v3  ;;  %655 = vmatpush3.bf16.msra.mxu1 %v729_v8  ;;  %v567_v41 = vld [vmem:[%s1004_s4] ss:$0 sm:$0xff]  ;;  %v749_v48 = vld [vmem:[#allocation8 + $0x8] sm:$0xff]  }
  0x3d   :  { %636 = vmatprep.subr.bf16.mxu0 %v865_v0  ;;  %656 = vmatprep.subr.bf16.mxu1 %v865_v0  ;;  %v750_v49 = vld [vmem:[#allocation8] sm:$0xff]  }
  0x3e   :  { %v576_v50 = vld [vmem:[%s1006_s6] ss:$0 sm:$0xff]  ;;  %s831_s6 = scalar_lea.vmem %s548_s14, 128 }
  0x3f   :  { %v585_v58 = vld [vmem:[%s1008_s8] ss:$0 sm:$0xff]  ;;  %p832_p6 = scmp.ne.s32.totalorder %s548_s14, %s831_s6  ;;  %p837_p8 = scmp.lt.s32.totalorder %s831_s6, %s831_s6 }
  0x40   :  { %637 = vmatpush3.bf16.msra.mxu0 %v722_v5  ;;  %657 = vmatpush3.bf16.msra.mxu1 %v730_v10 }
  0x41   :  { %638 = vmatprep.subr.bf16.mxu0 %v865_v0  ;;  %658 = vmatprep.subr.bf16.mxu1 %v865_v0  ;;  %p838_p9 = por %p837_p8, %p836_p7 }
  0x43   :  { %p839_p10 = pnand %p838_p9, %p832_p6 }
  0x44   :  { %639 = vmatpush3.bf16.msra.mxu0 %v723_v7  ;;  %659 = vmatpush3.bf16.msra.mxu1 %v731_v12 }
  0x45   :  { %640 = vmatprep.subr.bf16.mxu0 %v865_v0  ;;  %660 = vmatprep.subr.bf16.mxu1 %v865_v0 }
  0x48   :  { %641 = vmatpush3.bf16.msra.mxu0 %v724_v9  ;;  %661 = vmatpush3.bf16.msra.mxu1 %v732_v15 }
  0x49   :  { %642 = vmatprep.subr.bf16.mxu0 %v865_v0  ;;  %662 = vmatprep.subr.bf16.mxu1 %v865_v0 }
  0x4c   :  { %643 = vmatpush3.bf16.msra.mxu0 %v725_v11  ;;  %663 = vmatpush3.bf16.msra.mxu1 %v733_v17 }
  0x4d   :  { %644 = vmatprep.subr.bf16.mxu0 %v865_v0  ;;  %664 = vmatprep.subr.bf16.mxu1 %v865_v0 }
  0x50   :  { %645 = vmatpush3.bf16.msra.mxu0 %v726_v13  ;;  %665 = vmatpush3.bf16.msra.mxu1 %v734_v18 }
  0x51   :  { %670 = vmatprep.subr.bf16.mxu0 %v865_v0  ;;  %690 = vmatprep.subr.bf16.mxu1 %v865_v0 }
  0x53   :  { %647 = vmatmul.mubr.bf16.vlgmr.msra.gmra.mxu0 %v107_v16 }
  0x54   :  { %686 = vmatprep.mubr.msk.bf16.mxu0 %vm866_vm0, %v865_v0  ;;  %671 = vmatpush3.bf16.msra.mxu0 %v735_v19 }
  0x55   :  { %672 = vmatprep.subr.bf16.mxu0 %v865_v0 }
  0x58   :  { %673 = vmatpush3.bf16.msra.mxu0 %v736_v20 }
  0x59   :  { %674 = vmatprep.subr.bf16.mxu0 %v865_v0 }
  0x5c   :  { %675 = vmatpush3.bf16.msra.mxu0 %v737_v21 }
  0x5d   :  { %676 = vmatprep.subr.bf16.mxu0 %v865_v0 }
  0x60   :  { %677 = vmatpush3.bf16.msra.mxu0 %v738_v22 }
  0x61   :  { %678 = vmatprep.subr.bf16.mxu0 %v865_v0 }
  0x64   :  { %679 = vmatpush3.bf16.msra.mxu0 %v739_v23 }
  0x65   :  { %680 = vmatprep.subr.bf16.mxu0 %v865_v0 }
  0x68   :  { %681 = vmatpush3.bf16.msra.mxu0 %v740_v24 }
  0x69   :  { %682 = vmatprep.subr.bf16.mxu0 %v865_v0 }
  0x6c   :  { %683 = vmatpush3.bf16.msra.mxu0 %v741_v25 }
  0x6d   :  { %684 = vmatprep.subr.bf16.mxu0 %v865_v0 }
  0x70   :  { %685 = vmatpush3.bf16.msra.mxu0 %v742_v34 }
 0x113   :  { %v196_v27 = vpop.f32.mrf.mxu0 }
 0x114   :  { %v197_v28 = vadd.f32 %v558_v26, %v196_v27 }
 0x115   :  { %v648_v29 = vpop.f32.mrf.mxu0 }
 0x116   :  { %v202_v30 = vmax.f32 %v197_v28, 0.0 }
 0x117   :  { %v199_v31 = vpop.f32.mrf.mxu0 }
 0x118   :  { %v220_v32 = vpack.c.bf16 %v202_v30, %v202_v30 }
 0x119   :  { %v649_v33 = vpop.f32.mrf.mxu0 }
 0x11a   :  { %667 = vmatmul.mubr.bf16.vlgmr.msra.gmra.mxu1 %v220_v32 }
 0x11b   :  { %706 = vmatprep.mubr.msk.bf16.mxu1 %vm866_vm0, %v865_v0  ;;  %691 = vmatpush3.bf16.msra.mxu1 %v743_v35 }
 0x11c   :  { %692 = vmatprep.subr.bf16.mxu1 %v865_v0 }
 0x11f   :  { %693 = vmatpush3.bf16.msra.mxu1 %v744_v36 }
 0x120   :  { %694 = vmatprep.subr.bf16.mxu1 %v865_v0 }
 0x123   :  { %695 = vmatpush3.bf16.msra.mxu1 %v745_v37 }
 0x124   :  { %696 = vmatprep.subr.bf16.mxu1 %v865_v0 }
 0x127   :  { %697 = vmatpush3.bf16.msra.mxu1 %v746_v38 }
 0x128   :  { %698 = vmatprep.subr.bf16.mxu1 %v865_v0 }
 0x12b   :  { %699 = vmatpush3.bf16.msra.mxu1 %v747_v39 }
 0x12c   :  { %700 = vmatprep.subr.bf16.mxu1 %v865_v0 }
 0x12f   :  { %701 = vmatpush3.bf16.msra.mxu1 %v748_v40 }
 0x130   :  { %702 = vmatprep.subr.bf16.mxu1 %v865_v0 }
 0x133   :  { %703 = vmatpush3.bf16.msra.mxu1 %v749_v48 }
 0x134   :  { %704 = vmatprep.subr.bf16.mxu1 %v865_v0 }
 0x137   :  { %705 = vmatpush3.bf16.msra.mxu1 %v750_v49 }
 0x1da   :  { %v309_v42 = vpop.f32.mrf.mxu1 }
 0x1db   :  { %v310_v43 = vadd.f32 %v567_v41, %v309_v42 }
 0x1dc   :  { %v668_v44 = vpop.f32.mrf.mxu1 }
 0x1dd   :  { %v332_v45 = vpack.c.bf16 %v310_v43, %v310_v43 }
 0x1de   :  { %v312_v46 = vpop.f32.mrf.mxu1 }
 0x1df   :  { %687 = vmatmul.mubr.bf16.vlgmr.msra.gmra.mxu0 %v332_v45 }
 0x1e0   :  { %v669_v47 = vpop.f32.mrf.mxu1 }
 0x29f   :  { %v421_v51 = vpop.f32.mrf.mxu0 }
 0x2a0   :  { %v422_v52 = vadd.f32 %v576_v50, %v421_v51 }
 0x2a1   :  { %v688_v53 = vpop.f32.mrf.mxu0 }
 0x2a2   :  { %v427_v54 = vmax.f32 %v422_v52, 0.0 }
 0x2a3   :  { %v424_v55 = vpop.f32.mrf.mxu0 }
 0x2a4   :  { %v445_v56 = vpack.c.bf16 %v427_v54, %v427_v54 }
 0x2a5   :  { %v689_v57 = vpop.f32.mrf.mxu0 }
 0x2a6   :  { %707 = vmatmul.mubr.bf16.vlgmr.msra.gmra.mxu1 %v445_v56 }
 0x366   :  { %v534_v59 = vpop.f32.mrf.mxu1 }
 0x367   :  { %v535_v60 = vadd.f32 %v585_v58, %v534_v59 }
 0x368   :  { %v708_v61 = vpop.f32.mrf.mxu1 }
 0x369   :  { %540 = vst [vmem:[#allocation10] sm:$0xff] %v535_v60 }
 0x36a   :  { %v537_v62 = vpop.f32.mrf.mxu1 }
 0x36b   :  { %842 = shalt.err (!%p839_p10)
}
 0x36c   :  { %550 = dma.vmem_to_hbm [thread:$0]  %s548_s14, 128, %s1009_s9, [#allocation4]   ;;  %v709_v63 = vpop.f32.mrf.mxu1 }
 0x36d   :  { %857 = dma.done.wait [#allocation4], 128  }
 0x36e   :  { %858 = vsyncadd [#allocation4], 4294967168 }
 0x36f   :  { %554 = vsyncpa [#allocation3], 1 }
 0x370   :  { %555 = vsyncpa [#allocation6], 1 }
 0x371   :  { %556 = vsyncpa [#allocation9], 1 }
 0x372   :  { %557 = vsyncpa [#allocation4], 1 }

</bundles_post_ra>
